<compile_context>
chip_gen: v7x
topology: tpu7x:2x2x1
jax: 0.10.0
libtpu: 0.0.40
codegen_flags: <defaults>
</compile_context>

<pallas_src>
import jax
import jax.numpy as jnp
from jax.experimental import pallas as pl
from jax.experimental.pallas import tpu as pltpu

SCALE = 0.09
EPS = 1e-6


def _round_up(a: int, b: int) -> int:
    return (a + b - 1) // b * b


def _pick_tile(total: int, cap: int, mult: int) -> int:
    """Largest multiple of `mult` that is <= cap and divides `total`."""
    cap = max(mult, min(cap, total))
    cap -= cap % mult
    for t in range(cap, 0, -mult):
        if total % t == 0:
            return t
    return mult


def _vmem_capacity_bytes() -> int:
    try:
        return int(pltpu.get_tpu_info().vmem_capacity_bytes)
    except Exception:
        return 64 * 1024 * 1024  # conservative default (v7x per-TensorCore)


def _plan_tiles(n: int, d_p: int, out_p: int, op_bytes: int):
    """Pick (tm, tn, tk, n_p, vmem_limit). d_p/out_p are already 128-aligned."""
    vmem_cap = _vmem_capacity_bytes()
    small_vmem = vmem_cap <= (64 << 20)  # v7x: 64 MiB per TensorCore

    n_p = _round_up(n, 16)  # 16-row sublane packing for bf16 operands

    tm_cap = 512
    tn_cap = 512 if small_vmem else 1024
    tk_cap = 512 if small_vmem else 1024

    # Small-batch classifier head: one i tile => W is streamed from HBM once.
    tm = n_p if n_p <= 512 else _pick_tile(n_p, tm_cap, 16)
    tn = _pick_tile(out_p, tn_cap, 128)
    tk = _pick_tile(d_p, tk_cap, 128)

    # Keep >= 2 parallel blocks where possible so both v7x TensorCores work.
    if (n_p // tm) * (out_p // tn) == 1 and out_p >= 256:
        tn = _pick_tile(out_p, out_p // 2, 128)

    vmem_need = (
        2 * tm * tk * op_bytes      # x slabs, double-buffered
        + 2 * tn * tk * op_bytes    # W slabs, double-buffered
        + 2 * tm * tn * 4           # resident f32 output tile (+ next buffer)
        + 8 * (tm + tn) * 4         # norm vectors + slack
    )
    vmem_limit = int(min(vmem_cap * 3 // 4, max(2 * vmem_need, 16 << 20)))
    return tm, tn, tk, n_p, vmem_limit


def _cos_linear_kernel(x_ref, w_ref, inv_xn_ref, inv_wn_ref, o_ref):
    # x_ref:      (tm, tk)  bf16  current K-slab of the activations
    # w_ref:      (tn, tk)  bf16  current K-slab of the (row-major) weight
    # inv_xn_ref: (tm, 1)   f32   1/(||x_row||+eps), precomputed from f32 x
    # inv_wn_ref: (1,  tn)  f32   1/(||w_row||+eps) * (1/scale), precomputed
    # o_ref:      (tm, tn)  f32   output tile, doubles as the accumulator
    k = pl.program_id(2)

    @pl.when(k == 0)
    def _init():
        o_ref[...] = jnp.zeros_like(o_ref)

    # Raw partial dot on the MXU: bf16 operands, f32 accumulation, contracting
    # the shared last dim of both tiles (no transposed W tile materialized).
    o_ref[...] += jax.lax.dot_general(
        x_ref[...],
        w_ref[...],
        dimension_numbers=(((1,), (1,)), ((), ())),
        preferred_element_type=jnp.float32,
    )

    @pl.when(k == pl.num_programs(2) - 1)
    def _finalize():
        # out = (x @ W^T) * 1/(||x||+eps) * 1/(||w||+eps) / scale
        o_ref[...] *= inv_xn_ref[...] * inv_wn_ref[...]


def prepare_cos_linear_weight(weight: jax.Array, operand_dtype=jnp.bfloat16):
    """Parameter-only prep: pad to 128 multiples, cast, fold norms + 1/scale.

    Hoist/cache this whenever the head's weights are set — it reads and
    rewrites the full W in HBM and must not run on every forward call.
    """
    outdim, d = weight.shape
    d_p = _round_up(d, 128)
    out_p = _round_up(outdim, 128)

    wf = weight.astype(jnp.float32)
    w_norm = jnp.sqrt(jnp.sum(wf * wf, axis=1, keepdims=True))  # (outdim, 1) f32
    inv_wn = (1.0 / (w_norm + EPS) / SCALE).T                   # (1, outdim) f32

    w_op = wf.astype(operand_dtype)
    if (out_p, d_p) != (outdim, d):
        w_op = jnp.pad(w_op, ((0, out_p - outdim), (0, d_p - d)))
        inv_wn = jnp.pad(inv_wn, ((0, 0), (0, out_p - outdim)))
    return w_op, inv_wn


def cos_linear(x: jax.Array, weight: jax.Array, operand_dtype=jnp.bfloat16) -> jax.Array:
    """x: (N, indim), weight: (outdim, indim) -> (N, outdim) cosine scores / 0.09.

    Set operand_dtype=jnp.float32 for an opt-in full-precision MXU path.
    """
    n, d = x.shape
    outdim, d_w = weight.shape
    assert d == d_w, "feature dims must match"

    # NOTE: in a real model cache this at weight-set time instead of per call.
    w_op, inv_wn = prepare_cos_linear_weight(weight, operand_dtype)
    out_p, d_p = w_op.shape

    op_bytes = jnp.dtype(operand_dtype).itemsize
    tm, tn, tk, n_p, vmem_limit = _plan_tiles(n, d_p, out_p, op_bytes)

    # Row norms of x in f32 (before any low-precision cast), eps per reference.
    xf = x.astype(jnp.float32)
    x_norm = jnp.sqrt(jnp.sum(xf * xf, axis=1, keepdims=True))  # (n, 1) f32
    inv_xn = 1.0 / (x_norm + EPS)

    x_op = xf.astype(operand_dtype)
    if (n_p, d_p) != (n, d):
        x_op = jnp.pad(x_op, ((0, n_p - n), (0, d_p - d)))
        inv_xn = jnp.pad(inv_xn, ((0, n_p - n), (0, 0)))

    grid = (n_p // tm, out_p // tn, d_p // tk)

    out_padded = pl.pallas_call(
        _cos_linear_kernel,
        out_shape=jax.ShapeDtypeStruct((n_p, out_p), jnp.float32),
        grid_spec=pltpu.PrefetchScalarGridSpec(
            num_scalar_prefetch=0,
            grid=grid,
            in_specs=[
                pl.BlockSpec((tm, tk), lambda i, j, k: (i, k)),  # x slab
                pl.BlockSpec((tn, tk), lambda i, j, k: (j, k)),  # W slab (row-major)
                pl.BlockSpec((tm, 1), lambda i, j, k: (i, 0)),   # 1/(||x||+eps)
                pl.BlockSpec((1, tn), lambda i, j, k: (0, j)),   # 1/(||w||+eps)/scale
            ],
            out_specs=pl.BlockSpec((tm, tn), lambda i, j, k: (i, j)),
        ),
        compiler_params=pltpu.CompilerParams(
            dimension_semantics=("parallel", "parallel", "arbitrary"),
            vmem_limit_bytes=vmem_limit,
        ),
    )(x_op, w_op, inv_xn, inv_wn)

    return out_padded[:n, :outdim]


def _reference(x, weight):
    x_norm = jnp.linalg.norm(x, axis=1, keepdims=True)
    x_n = x / (x_norm + EPS)
    w_norm = jnp.linalg.norm(weight, axis=1, keepdims=True)
    w_n = weight / (w_norm + EPS)
    return (x_n @ w_n.T) / SCALE


if __name__ == "__main__":
    # Small shapes consistent with cosLinear(indim=32, outdim=16) on batch=8.
    indim, outdim, batch = 32, 16, 8

    key = jax.random.PRNGKey(0)
    kx, kw = jax.random.split(key)
    x = jax.random.normal(kx, (batch, indim), dtype=jnp.float32)
    # Deterministic stand-in for nn.Linear(indim, outdim, bias=False).weight.
    weight = jax.random.normal(kw, (outdim, indim), dtype=jnp.float32) * 0.1

    scores = cos_linear(x, weight)
    jax.block_until_ready(scores)

    ref = _reference(x, weight)
    assert scores.shape == (batch, outdim)
    # Tolerance accounts for bf16 MXU operands (use operand_dtype=jnp.float32
    # for tighter numerics).
    assert jnp.allclose(scores, ref, atol=5e-2, rtol=5e-2), "mismatch vs reference"

    print("KERNEL_OK")
</pallas_src>

<mosaic_0001>
module attributes {stable_mosaic.version = 11 : i64} {
  func.func @_cos_linear_kernel(%arg0: i32, %arg1: i32, %arg2: i32, %arg3: memref<16x128xbf16, #tpu.memory_space<vmem>>, %arg4: memref<128x128xbf16, #tpu.memory_space<vmem>>, %arg5: memref<16x1xf32, #tpu.memory_space<vmem>>, %arg6: memref<1x128xf32, #tpu.memory_space<vmem>>, %arg7: memref<16x128xf32, #tpu.memory_space<vmem>>) attributes {dimension_semantics = [#tpu.dimension_semantics<parallel>, #tpu.dimension_semantics<parallel>, #tpu.dimension_semantics<arbitrary>], iteration_bounds = array<i64: 1, 1, 1>, scalar_prefetch = 0 : i64, scratch_operands = 0 : i64, tpu.core_type = #tpu.core_type<tc>, window_params = [{transform_indices = @transform_0, window_bounds = array<i64: 16, 128>}, {transform_indices = @transform_1, window_bounds = array<i64: 128, 128>}, {transform_indices = @transform_2, window_bounds = array<i64: 16, 1>}, {transform_indices = @transform_3, window_bounds = array<i64: 1, 128>}, {transform_indices = @transform_4, window_bounds = array<i64: 16, 128>}]} {
    %c0_i32 = arith.constant 0 : i32
    %0 = arith.cmpi eq, %arg2, %c0_i32 : i32
    %1 = arith.extui %0 : i1 to i32
    %c0_i32_0 = arith.constant 0 : i32
    %2 = arith.cmpi ne, %1, %c0_i32_0 : i32
    scf.if %2 {
      %cst_10 = arith.constant 0.000000e+00 : f32
      %12 = vector.broadcast %cst_10 : f32 to vector<16x128xf32>
      %c0_11 = arith.constant 0 : index
      %c0_12 = arith.constant 0 : index
      %13 = vector.load %arg7[%c0_11, %c0_12] : memref<16x128xf32, #tpu.memory_space<vmem>>, vector<16x128xf32>
      tpu.vector_store %arg7[%c0_11, %c0_12], %12 {strides = array<i32>} : memref<16x128xf32, #tpu.memory_space<vmem>>, vector<16x128xf32>,
    } else {
    }
    %c0 = arith.constant 0 : index
    %c0_1 = arith.constant 0 : index
    %3 = vector.load %arg7[%c0, %c0_1] : memref<16x128xf32, #tpu.memory_space<vmem>>, vector<16x128xf32>
    %c0_2 = arith.constant 0 : index
    %c0_3 = arith.constant 0 : index
    %4 = vector.load %arg3[%c0_2, %c0_3] : memref<16x128xbf16, #tpu.memory_space<vmem>>, vector<16x128xbf16>
    %c0_4 = arith.constant 0 : index
    %c0_5 = arith.constant 0 : index
    %5 = vector.load %arg4[%c0_4, %c0_5] : memref<128x128xbf16, #tpu.memory_space<vmem>>, vector<128x128xbf16>
    %cst = arith.constant dense<0.000000e+00> : vector<16x128xf32>
    %6 = tpu.matmul %4, %5, %cst {dimension_numbers = #tpu.dot_dimension_numbers<[1], [1], [0], [0], [0, 0, 1, 0], [], []>} : vector<16x128xbf16>, vector<128x128xbf16>, vector<16x128xf32> -> vector<16x128xf32>
    %7 = arith.addf %3, %6 : vector<16x128xf32>
    %c0_6 = arith.constant 0 : index
    %c0_7 = arith.constant 0 : index
    %8 = vector.load %arg7[%c0_6, %c0_7] : memref<16x128xf32, #tpu.memory_space<vmem>>, vector<16x128xf32>
    tpu.vector_store %arg7[%c0_6, %c0_7], %7 {strides = array<i32>} : memref<16x128xf32, #tpu.memory_space<vmem>>, vector<16x128xf32>,
    %c0_i32_8 = arith.constant 0 : i32
    %9 = arith.cmpi eq, %arg2, %c0_i32_8 : i32
    %10 = arith.extui %9 : i1 to i32
    %c0_i32_9 = arith.constant 0 : i32
    %11 = arith.cmpi ne, %10, %c0_i32_9 : i32
    scf.if %11 {
      %c0_10 = arith.constant 0 : index
      %c0_11 = arith.constant 0 : index
      %12 = vector.load %arg7[%c0_10, %c0_11] : memref<16x128xf32, #tpu.memory_space<vmem>>, vector<16x128xf32>
      %c0_12 = arith.constant 0 : index
      %c0_13 = arith.constant 0 : index
      %13 = vector.load %arg5[%c0_12, %c0_13] : memref<16x1xf32, #tpu.memory_space<vmem>>, vector<16x1xf32>
      %c0_14 = arith.constant 0 : index
      %c0_15 = arith.constant 0 : index
      %14 = vector.load %arg6[%c0_14, %c0_15] : memref<1x128xf32, #tpu.memory_space<vmem>>, vector<1x128xf32>
      %15 = vector.broadcast %13 : vector<16x1xf32> to vector<16x128xf32>
      %16 = vector.broadcast %14 : vector<1x128xf32> to vector<16x128xf32>
      %17 = arith.mulf %15, %16 : vector<16x128xf32>
      %18 = arith.mulf %12, %17 : vector<16x128xf32>
      %c0_16 = arith.constant 0 : index
      %c0_17 = arith.constant 0 : index
      %19 = vector.load %arg7[%c0_16, %c0_17] : memref<16x128xf32, #tpu.memory_space<vmem>>, vector<16x128xf32>
      tpu.vector_store %arg7[%c0_16, %c0_17], %18 {strides = array<i32>} : memref<16x128xf32, #tpu.memory_space<vmem>>, vector<16x128xf32>,
    } else {
    }
    return
  }
  func.func @transform_0(%arg0: i32, %arg1: i32, %arg2: i32) -> (i32, i32) {
    %c0_i32 = arith.constant 0 : i32
    return %arg0, %arg2 : i32, i32
  }
  func.func @transform_1(%arg0: i32, %arg1: i32, %arg2: i32) -> (i32, i32) {
    %c0_i32 = arith.constant 0 : i32
    return %arg1, %arg2 : i32, i32
  }
  func.func @transform_2(%arg0: i32, %arg1: i32, %arg2: i32) -> (i32, i32) {
    %c0_i32 = arith.constant 0 : i32
    %c0_i32_0 = arith.constant 0 : i32
    return %arg0, %c0_i32 : i32, i32
  }
  func.func @transform_3(%arg0: i32, %arg1: i32, %arg2: i32) -> (i32, i32) {
    %c0_i32 = arith.constant 0 : i32
    %c0_i32_0 = arith.constant 0 : i32
    return %c0_i32, %arg1 : i32, i32
  }
  func.func @transform_4(%arg0: i32, %arg1: i32, %arg2: i32) -> (i32, i32) {
    %c0_i32 = arith.constant 0 : i32
    return %arg0, %arg1 : i32, i32
  }
}

</mosaic_0001>

<bundles_post_ra>
// kernel: tpu_custom_call.1
= control target key start
LH: loop header
LB: loop body
LE: loop exit
PB: predicated region body
PF: predicated region fallthrough
CT: control target
= control target key end

     0   :  { %9 = vsyncpa [#allocation3], 0  ;;  %s381_s0 = inlined_call_operand.vmem [shape: bf16[16,128], index: 0, kind: input, shape index: {}]   ;;  %s382_s1 = inlined_call_operand.hbm [shape: bf16[128,128], index: 1, kind: input, shape index: {}]   ;;  %s383_s2 = inlined_call_operand.vmem [shape: f32[16,1], index: 2, kind: input, shape index: {}]   ;;  %s384_s3 = inlined_call_operand.vmem [shape: f32[1,128], index: 3, kind: input, shape index: {}]   ;;  %s385_s4 = inlined_call_operand.hbm [shape: f32[16,128], index: 4, kind: output, shape index: {}]  }
   0x1   :  { %10 = vsyncpa [#allocation4], 0  ;;  %s311_s15 = smov [#allocation2]   ;;  %s263_s19 = scalar_lea.hbm %s382_s1, 1024 }
   0x2   :  { %s18_s16 = sshll.u32 %s311_s15, 4  ;;  %p264_p0 = scmp.ne.s32.totalorder %s382_s1, %s263_s19  ;;  %s19_s16 = int_to_ptr.vmem [resolvable:$true] %s18_s16 }
   0x3   :  { %p267_p1 = scmp.lt.u32.totalorder %s263_s19, %s382_s1 }
   0x5   :  { %p269_p2 = pnand %p267_p1, %p264_p0 }
   0x7   :  { %272 = shalt.err (!%p269_p2)
}
   0x8   :  { %s273_s24 = scalar_lea.vmem %s19_s16, 1024  ;;  %p278_p4 = scmp.lt.s32.totalorder %s19_s16, %s19_s16 }
   0x9   :  { %p274_p3 = scmp.ne.s32.totalorder %s19_s16, %s273_s24  ;;  %p279_p5 = scmp.lt.s32.totalorder %s273_s24, %s273_s24 }
   0xb   :  { %p280_p6 = por %p279_p5, %p278_p4 }
   0xd   :  { %p281_p7 = pnand %p280_p6, %p274_p3 }
   0xf   :  { %284 = shalt.err (!%p281_p7)
}
  0x10   :  { %s312_s25 = smov 64   ;;  %s313_s26 = smov 4  }
  0x11   :  { %24 = dma.hbm_to_vmem [thread:$0]  %s382_s1, 1024, %s19_s16, [#allocation3], %s312_s25, %s312_s25, %s313_s26  }
  0x12   :  { %307 = dma.done.wait [#allocation3], 1024  }
  0x13   :  { %308 = vsyncadd [#allocation3], 4294966272  ;;  %v314_v0 = vmov 0.0   ;;  %vm315_vm0 = vmmov 0   ;;  %v316_v1 = vmov 0   ;;  %v254_v2 = vld [vmem:[#allocation2] sm:$0xff]  }
  0x14   :  { %224 = vmatprep.subr.bf16.mxu0 %v314_v0  ;;  %240 = vmatprep.mubr.msk.bf16.mxu0 %vm315_vm0, %v314_v0  ;;  %v255_v3 = vld [vmem:[#allocation2 + $0x8] sm:$0xff]   ;;  %v163_v4 = vld [vmem:[%s383_s2] sm:$0xff]  ;;  %v256_v6 = vld [vmem:[#allocation2 + $0x10] sm:$0xff]   ;;  %s317_s9 = smov [#allocation5]  }
  0x15   :  { %253 = vset.pattern.permute.xlu0 %v316_v1  ;;  %225 = vmatpush3.bf16.xpose.msra.mxu0 %v254_v2  ;;  %v164_v5 = vld [vmem:[%s383_s2 + $0x8] sm:$0xff]  ;;  %v257_v7 = vld [vmem:[#allocation2 + $0x18] sm:$0xff]   ;;  %v258_v8 = vld [vmem:[#allocation2 + $0x20] sm:$0xff]   ;;  %s193_s10 = sshll.u32 %s317_s9, 4  ;;  %s194_s10 = int_to_ptr.vmem [resolvable:$true] %s193_s10 }
  0x16   :  { %226 = vmatprep.subr.bf16.mxu0 %v314_v0  ;;  %168 = vperm.xlu0 %253, %v163_v4   ;;  %v259_v9 = vld [vmem:[#allocation2 + $0x28] sm:$0xff]   ;;  %v260_v10 = vld [vmem:[#allocation2 + $0x30] sm:$0xff]   ;;  %v261_v11 = vld [vmem:[#allocation2 + $0x38] sm:$0xff]   ;;  %p290_p9 = scmp.lt.s32.totalorder %s194_s10, %s194_s10 }
  0x17   :  { %v262_v12 = vld [vmem:[%s381_s0] sm:$0xff]   ;;  %s285_s0 = scalar_lea.vmem %s194_s10, 256 }
  0x18   :  { %v214_v14 = vld [vmem:[%s384_s3] ss:$0 sm:$0xff]  ;;  %p286_p8 = scmp.ne.s32.totalorder %s194_s10, %s285_s0  ;;  %p291_p10 = scmp.lt.s32.totalorder %s285_s0, %s285_s0 }
  0x1a   :  { %173 = vperm.xlu0 %253, %v164_v5   ;;  %p292_p11 = por %p291_p10, %p290_p9 }
  0x1c   :  { %p293_p12 = pnand %p292_p11, %p286_p8 }
  0x1d   :  { %227 = vmatpush3.bf16.xpose.msra.mxu0 %v255_v3 }
  0x1e   :  { %228 = vmatprep.subr.bf16.mxu0 %v314_v0 }
  0x25   :  { %229 = vmatpush3.bf16.xpose.msra.mxu0 %v256_v6 }
  0x26   :  { %230 = vmatprep.subr.bf16.mxu0 %v314_v0 }
  0x2d   :  { %231 = vmatpush3.bf16.xpose.msra.mxu0 %v257_v7 }
  0x2e   :  { %232 = vmatprep.subr.bf16.mxu0 %v314_v0 }
  0x35   :  { %233 = vmatpush3.bf16.xpose.msra.mxu0 %v258_v8 }
  0x36   :  { %234 = vmatprep.subr.bf16.mxu0 %v314_v0 }
  0x3d   :  { %235 = vmatpush3.bf16.xpose.msra.mxu0 %v259_v9 }
  0x3e   :  { %236 = vmatprep.subr.bf16.mxu0 %v314_v0 }
  0x45   :  { %237 = vmatpush3.bf16.xpose.msra.mxu0 %v260_v10 }
  0x46   :  { %238 = vmatprep.subr.bf16.mxu0 %v314_v0 }
  0x4d   :  { %239 = vmatpush3.bf16.xpose.msra.mxu0 %v261_v11 }
  0x54   :  { %241 = vmatmul.mubr.bf16.vlgmr.msra.gmra.mrb[0].mxu0 %v262_v12 }
  0x95   :  { %v169_v13 = vpop.permute.xlu0 %168 }
  0x96   :  { %v182_v18 = vmul.f32 %v214_v14, %v169_v13 }
  0x99   :  { %v174_v16 = vpop.permute.xlu0 %173 }
  0x9a   :  { %v183_v22 = vmul.f32 %v214_v14, %v174_v16 }
 0x127   :  { %v147_v15 = vpop.f32.mrb[0].mxu0 }
 0x128   :  { %v242_v17 = vpop.f32.mrb[1].mxu0  ;;  %v184_v20 = vmul.f32 %v182_v18, %v147_v15 }
 0x129   :  { %v150_v19 = vpop.f32.mrb[2].mxu0 }
 0x12a   :  { %v243_v21 = vpop.f32.mrb[3].mxu0  ;;  %186 = vst [vmem:[#allocation5] sm:$0xff] %v184_v20  ;;  %v185_v23 = vmul.f32 %v183_v22, %v150_v19 }
 0x12c   :  { %187 = vst [vmem:[#allocation5 + $0x8] sm:$0xff] %v185_v23 }
 0x12d   :  { %296 = shalt.err (!%p293_p12)
}
 0x12e   :  { %s297_s12 = scalar_lea.hbm %s385_s4, 256 }
 0x12f   :  { %p298_p13 = scmp.ne.s32.totalorder %s385_s4, %s297_s12  ;;  %p301_p0 = scmp.lt.u32.totalorder %s297_s12, %s385_s4 }
 0x131   :  { %p303_p1 = pnand %p301_p0, %p298_p13 }
 0x133   :  { %306 = shalt.err (!%p303_p1)
}
 0x134   :  { %s318_s17 = smov 128   ;;  %s319_s18 = smov 8  }
 0x135   :  { %199 = dma.vmem_to_hbm [thread:$0]  %s194_s10, 256, %s385_s4, [#allocation4], %s318_s17, %s318_s17, %s319_s18  }
 0x136   :  { %309 = dma.done.wait [#allocation4], 256  }
 0x137   :  { %310 = vsyncadd [#allocation4], 4294967040 }
 0x138   :  { %203 = vsyncpa [#allocation3], 1 }
 0x139   :  { %204 = vsyncpa [#allocation4], 1 }

</bundles_post_ra>
